<compile_context>
chip_gen: v5e
topology: v5e:2x2
jax: 0.10.0
libtpu: 0.0.40
codegen_flags: <defaults>
</compile_context>

<pallas_src>
import numpy as np
import jax
import jax.numpy as jnp
from jax import lax
from jax.experimental import pallas as pl
from jax.experimental.pallas import tpu as pltpu


def _choose_row_tile(m_total, row_tile=None, max_rows=128):
    """Pick the matmul M tile: largest divisor of M_total that is a multiple of 8
    and <= max_rows (caps the f32 accumulator at ~16 vregs on v5e/v6e), or the full
    M_total when it already fits."""
    if row_tile is not None:
        if m_total % row_tile != 0 or not (row_tile % 8 == 0 or row_tile == m_total):
            raise ValueError("row_tile must divide N*H_out and be a multiple of 8 "
                             "(or equal N*H_out)")
        return row_tile
    if m_total <= max_rows:
        return m_total
    best = m_total   # TODO(synk): fallback may exceed VMEM for very large inputs
    for d in range(8, max_rows + 1, 8):
        if m_total % d == 0:
            best = d
    return best


def _build_conv_call(M_total, TM, KWC_pad, WC_out, in_dtype, out_dtype):
    """pallas_call for fixed static shapes.

    Lane-dense layouts:
      x:     (M_total, KWC_pad)   row-im2col rows, M = n*H_out + h, lanes = kh,wp,c
      w:     (KWC_pad, WC_out)    banded ("lowered conv") weights, BN scale folded in
      shift: (1, WC_out)          folded BN shift (incl. conv bias), tiled per column
      out:   (M_total, WC_out)    packed output, column = w*C_out + o
    """
    n_tiles = M_total // TM
    in_item = jnp.dtype(in_dtype).itemsize
    out_item = jnp.dtype(out_dtype).itemsize

    def kernel(x_ref, w_ref, shift_ref, o_ref):
        # One deep MXU matmul per tile; f32 accumulation.
        acc = jnp.dot(x_ref[...], w_ref[...], preferred_element_type=jnp.float32)
        # Fused (scale-folded) BatchNorm shift + ReLU epilogue; lane-dense store.
        y = jnp.maximum(acc + shift_ref[...], 0.0)
        o_ref[...] = y.astype(o_ref.dtype)

    # TODO(synk): for large SSD layers, mark the constant-index w/shift specs with
    # pipeline_mode=pl.Buffered(1) to avoid double-buffering the big weight on v7x.
    grid_spec = pltpu.PrefetchScalarGridSpec(
        num_scalar_prefetch=0,
        grid=(n_tiles,),
        in_specs=[
            pl.BlockSpec((TM, KWC_pad), lambda i: (i, 0)),
            pl.BlockSpec((KWC_pad, WC_out), lambda i: (0, 0)),
            pl.BlockSpec((1, WC_out), lambda i: (0, 0)),
        ],
        out_specs=pl.BlockSpec((TM, WC_out), lambda i: (i, 0)),
    )

    block_bytes = (TM * KWC_pad * in_item            # x tile
                   + KWC_pad * WC_out * in_item      # weight
                   + WC_out * 4                      # shift
                   + TM * WC_out * out_item)         # out tile
    vmem_limit = int(min(max(4 * block_bytes + (4 << 20), 16 << 20), 64 << 20))

    cost = pl.CostEstimate(
        flops=int(2 * M_total * KWC_pad * WC_out),
        transcendentals=0,
        bytes_accessed=int(M_total * KWC_pad * in_item
                           + KWC_pad * WC_out * in_item
                           + WC_out * 4
                           + M_total * WC_out * out_item),
    )

    return pl.pallas_call(
        kernel,
        out_shape=jax.ShapeDtypeStruct((M_total, WC_out), out_dtype),
        grid_spec=grid_spec,
        compiler_params=pltpu.CompilerParams(
            dimension_semantics=("parallel",),
            vmem_limit_bytes=vmem_limit),
        cost_estimate=cost,
    )


def conv_bn_relu(x_nchw, weight, bias, gamma, beta, running_mean, running_var,
                 *, stride, padding, eps=1e-5, compute_dtype=jnp.bfloat16,
                 out_dtype=jnp.float32, row_tile=None):
    """Equivalent of conv.forward() for NCHW input (eval-mode BatchNorm)."""
    N, C_in, H, W = x_nchw.shape
    C_out, _, K, _ = weight.shape
    S = stride
    H_pad, W_pad = H + 2 * padding, W + 2 * padding
    H_out = (H_pad - K) // S + 1
    W_out = (W_pad - K) // S + 1
    WC_in = W_pad * C_in
    WC_out = W_out * C_out
    KWC = K * WC_in
    KWC_pad = ((KWC + 127) // 128) * 128        # lane-align the contraction depth

    M_total = N * H_out
    TM = _choose_row_tile(M_total, row_tile)

    # ---- glue (plain JAX): NHWC packing, pad, row-im2col (kh folded into lanes) ----
    # TODO(synk): for a full SSD model keep activations in the packed NHWC/im2col
    # layout end-to-end (or pull rows in-kernel via pl.ANY + make_async_copy) so the
    # transpose/pad HBM passes are not paid per layer.
    x_nhwc = jnp.transpose(x_nchw, (0, 2, 3, 1))                     # NCHW -> NHWC
    x_p = jnp.pad(x_nhwc, ((0, 0), (padding, padding), (padding, padding), (0, 0)))
    x_flat = x_p.reshape(N, H_pad, WC_in)                            # (N, H_pad, W_pad*C_in)
    taps = [lax.slice_in_dim(x_flat, kh, kh + (H_out - 1) * S + 1, stride=S, axis=1)
            for kh in range(K)]                                      # each (N, H_out, WC_in)
    x_rows = jnp.concatenate(taps, axis=-1)                          # lanes = kh*WC_in + wp*C_in + c
    x_mat = x_rows.reshape(M_total, KWC)
    if KWC_pad != KWC:
        x_mat = jnp.pad(x_mat, ((0, 0), (0, KWC_pad - KWC)))
    x_mat = x_mat.astype(compute_dtype)

    # Fold conv bias + eval-mode BatchNorm into per-channel scale/shift.
    inv_std = 1.0 / jnp.sqrt(running_var.astype(jnp.float32) + eps)
    scale_c = gamma.astype(jnp.float32) * inv_std
    shift_c = beta.astype(jnp.float32) + (bias - running_mean).astype(jnp.float32) * scale_c

    # Banded ("lowered") weights with kh folded into the contraction:
    #   w_big[kh*WC_in + wp*C_in + c, w*C_out + o] = W[o,c,kh,kw]*scale[o]  iff wp == S*w + kw
    # TODO(synk): for late SSD layers (large C_in/C_out) switch to an im2col matmul
    # with a C_out grid axis; the banded weight would be too large there.
    w_hwio = jnp.transpose(weight, (2, 3, 1, 0)).astype(jnp.float32)   # (K, K, C_in, C_out)
    sel = np.zeros((W_pad, K, W_out), np.float32)
    for kw in range(K):
        sel[kw + S * np.arange(W_out), kw, np.arange(W_out)] = 1.0
    w_band = jnp.einsum('pkw,hkco->hpcwo', jnp.asarray(sel), w_hwio)   # (K,W_pad,C_in,W_out,C_out)
    w_big = w_band.reshape(KWC, WC_out)
    scale_col = jnp.tile(scale_c, (W_out,))                            # column w*C_out+o -> scale[o]
    w_big = w_big * scale_col[None, :]                                 # BN scale folded into weights
    if KWC_pad != KWC:
        w_big = jnp.pad(w_big, ((0, KWC_pad - KWC), (0, 0)))
    w_big = w_big.astype(compute_dtype)
    shift = jnp.tile(shift_c, (W_out,)).reshape(1, WC_out).astype(jnp.float32)

    call = _build_conv_call(M_total, TM, KWC_pad, WC_out, compute_dtype, out_dtype)
    out_packed = call(x_mat, w_big, shift)                             # (N*H_out, W_out*C_out)
    out_nhwc = out_packed.reshape(N, H_out, W_out, C_out)
    return jnp.transpose(out_nhwc, (0, 3, 1, 2))                       # NHWC -> NCHW


def _reference(x_nchw, weight, bias, gamma, beta, running_mean, running_var,
               *, stride, padding, eps=1e-5):
    y = lax.conv_general_dilated(
        x_nchw, weight,
        window_strides=(stride, stride),
        padding=[(padding, padding), (padding, padding)],
        dimension_numbers=("NCHW", "OIHW", "NCHW"))
    y = y + bias.reshape(1, -1, 1, 1)
    inv_std = 1.0 / jnp.sqrt(running_var + eps)
    y = (y - running_mean.reshape(1, -1, 1, 1)) * (gamma * inv_std).reshape(1, -1, 1, 1) \
        + beta.reshape(1, -1, 1, 1)
    return jnp.maximum(y, 0.0)


if __name__ == "__main__":
    # Small shapes consistent with the module: conv(in_ch=4, out_ch=8, k=3, stride=1, pad=1)
    N, C_in, H, W = 2, 4, 16, 16
    C_out, K, stride, padding = 8, 3, 1, 1

    key = jax.random.PRNGKey(0)
    kx, kw_, kb, kg, kbt, km, kv = jax.random.split(key, 7)

    x = jax.random.normal(kx, (N, C_in, H, W), dtype=jnp.float32)
    weight = jax.random.normal(kw_, (C_out, C_in, K, K), dtype=jnp.float32) * 0.1
    bias = jax.random.normal(kb, (C_out,), dtype=jnp.float32) * 0.1
    gamma = 1.0 + 0.1 * jax.random.normal(kg, (C_out,), dtype=jnp.float32)
    beta = 0.1 * jax.random.normal(kbt, (C_out,), dtype=jnp.float32)
    running_mean = 0.1 * jax.random.normal(km, (C_out,), dtype=jnp.float32)
    running_var = jnp.abs(1.0 + 0.1 * jax.random.normal(kv, (C_out,), dtype=jnp.float32))

    ref = _reference(x, weight, bias, gamma, beta, running_mean, running_var,
                     stride=stride, padding=padding)

    # f32 MXU operands, default tiling: M = N*H_out = 32 rows in one tile, grid=(1,).
    out_f32 = conv_bn_relu(x, weight, bias, gamma, beta, running_mean, running_var,
                           stride=stride, padding=padding,
                           compute_dtype=jnp.float32, out_dtype=jnp.float32)
    out_f32 = jax.block_until_ready(out_f32)
    assert out_f32.shape == (N, C_out, H, W)
    assert jnp.allclose(out_f32, ref, rtol=1e-4, atol=1e-4), "f32 mismatch vs reference"

    # Multi-tile grid path (row_tile=8 -> grid=(4,)) still has to be exact in f32.
    out_f32_t = conv_bn_relu(x, weight, bias, gamma, beta, running_mean, running_var,
                             stride=stride, padding=padding,
                             compute_dtype=jnp.float32, out_dtype=jnp.float32, row_tile=8)
    out_f32_t = jax.block_until_ready(out_f32_t)
    assert jnp.allclose(out_f32_t, ref, rtol=1e-4, atol=1e-4), "tiled f32 mismatch vs reference"

    # bf16 MXU operands + bf16 writeback (default fast path; f32 accumulation/epilogue).
    out_bf16 = conv_bn_relu(x, weight, bias, gamma, beta, running_mean, running_var,
                            stride=stride, padding=padding,
                            compute_dtype=jnp.bfloat16, out_dtype=jnp.bfloat16)
    out_bf16 = jax.block_until_ready(out_bf16)
    assert out_bf16.shape == (N, C_out, H, W)
    assert jnp.allclose(out_bf16.astype(jnp.float32), ref, rtol=5e-2, atol=5e-2), \
        "bf16 mismatch vs reference"

    print("KERNEL_OK")
</pallas_src>

<mosaic_0001>
module attributes {stable_mosaic.version = 11 : i64} {
  func.func @kernel(%arg0: i32, %arg1: memref<32x256xf32, #tpu.memory_space<vmem>>, %arg2: memref<256x128xf32, #tpu.memory_space<vmem>>, %arg3: memref<1x128xf32, #tpu.memory_space<vmem>>, %arg4: memref<32x128xf32, #tpu.memory_space<vmem>>) attributes {dimension_semantics = [#tpu.dimension_semantics<parallel>], iteration_bounds = array<i64: 1>, scalar_prefetch = 0 : i64, scratch_operands = 0 : i64, tpu.core_type = #tpu.core_type<tc>, window_params = [{transform_indices = @transform_0, window_bounds = array<i64: 32, 256>}, {pipeline_mode = #tpu.pipeline_mode<synchronous>, transform_indices = @transform_1, window_bounds = array<i64: 256, 128>}, {pipeline_mode = #tpu.pipeline_mode<synchronous>, transform_indices = @transform_2, window_bounds = array<i64: 1, 128>}, {transform_indices = @transform_3, window_bounds = array<i64: 32, 128>}]} {
    %c0 = arith.constant 0 : index
    %c0_0 = arith.constant 0 : index
    %0 = vector.load %arg1[%c0, %c0_0] : memref<32x256xf32, #tpu.memory_space<vmem>>, vector<32x256xf32>
    %c0_1 = arith.constant 0 : index
    %c0_2 = arith.constant 0 : index
    %1 = vector.load %arg2[%c0_1, %c0_2] : memref<256x128xf32, #tpu.memory_space<vmem>>, vector<256x128xf32>
    %cst = arith.constant dense<0.000000e+00> : vector<32x128xf32>
    %2 = tpu.matmul %0, %1, %cst {dimension_numbers = #tpu.dot_dimension_numbers<[1], [0], [0], [1], [0, 0, 1, 1], [], []>} : vector<32x256xf32>, vector<256x128xf32>, vector<32x128xf32> -> vector<32x128xf32>
    %c0_3 = arith.constant 0 : index
    %c0_4 = arith.constant 0 : index
    %3 = vector.load %arg3[%c0_3, %c0_4] : memref<1x128xf32, #tpu.memory_space<vmem>>, vector<1x128xf32>
    %4 = vector.broadcast %3 : vector<1x128xf32> to vector<32x128xf32>
    %5 = arith.addf %2, %4 : vector<32x128xf32>
    %cst_5 = arith.constant 0.000000e+00 : f32
    %6 = vector.broadcast %cst_5 : f32 to vector<32x128xf32>
    %7 = arith.maximumf %5, %6 : vector<32x128xf32>
    %c0_6 = arith.constant 0 : index
    %c0_7 = arith.constant 0 : index
    %8 = vector.load %arg4[%c0_6, %c0_7] : memref<32x128xf32, #tpu.memory_space<vmem>>, vector<32x128xf32>
    tpu.vector_store %arg4[%c0_6, %c0_7], %7 {strides = array<i32>} : memref<32x128xf32, #tpu.memory_space<vmem>>, vector<32x128xf32>,
    return
  }
  func.func @transform_0(%arg0: i32) -> (i32, i32) {
    %c0_i32 = arith.constant 0 : i32
    %c0_i32_0 = arith.constant 0 : i32
    return %arg0, %c0_i32 : i32, i32
  }
  func.func @transform_1(%arg0: i32) -> (i32, i32) {
    %c0_i32 = arith.constant 0 : i32
    %c0_i32_0 = arith.constant 0 : i32
    %c0_i32_1 = arith.constant 0 : i32
    return %c0_i32, %c0_i32_0 : i32, i32
  }
  func.func @transform_2(%arg0: i32) -> (i32, i32) {
    %c0_i32 = arith.constant 0 : i32
    %c0_i32_0 = arith.constant 0 : i32
    %c0_i32_1 = arith.constant 0 : i32
    return %c0_i32, %c0_i32_0 : i32, i32
  }
  func.func @transform_3(%arg0: i32) -> (i32, i32) {
    %c0_i32 = arith.constant 0 : i32
    %c0_i32_0 = arith.constant 0 : i32
    return %arg0, %c0_i32 : i32, i32
  }
}

</mosaic_0001>

<bundles_post_ra>
// kernel: tpu_custom_call.1
= control target key start
LH: loop header
LB: loop body
LE: loop exit
PB: predicated region body
PF: predicated region fallthrough
CT: control target
= control target key end

     0   :  { %8 = vsyncpa [#allocation3], 0  ;;  %s340_s0 = inlined_call_operand.hbm [shape: f32[32,256], index: 0, kind: input, shape index: {}]   ;;  %s341_s1 = inlined_call_operand.hbm [shape: f32[256,128], index: 1, kind: input, shape index: {}]   ;;  %s342_s2 = inlined_call_operand.vmem [shape: f32[1,128], index: 2, kind: input, shape index: {}]   ;;  %s343_s3 = inlined_call_operand.hbm [shape: f32[32,128], index: 3, kind: output, shape index: {}]  }
   0x1   :  { %9 = vsyncpa [#allocation6], 0 }
   0x2   :  { %10 = vsyncpa [#allocation4], 0  ;;  %s15_s14 = sshll.u32 %s340_s0, 4  ;;  %s295_s15 = smov [#allocation2]   ;;  %s16_s14 = int_to_ptr.hbm [resolvable:$true] %s15_s14 }
   0x3   :  { %s17_s16 = sshll.u32 %s295_s15, 4  ;;  %s28_s19 = sshll.u32 %s341_s1, 4  ;;  %s18_s16 = int_to_ptr.vmem [resolvable:$true] %s17_s16  ;;  %s29_s19 = int_to_ptr.hbm [resolvable:$true] %s28_s19 }
   0x4   :  { %s296_s20 = smov 256   ;;  %s297_s21 = smov 16  }
   0x5   :  { %23 = dma.hbm_to_vmem [thread:$0]  %s16_s14, 1024, %s18_s16, [#allocation3], %s296_s20, %s296_s20, %s297_s21  }
   0x6   :  { %s298_s22 = smov [#allocation5]   ;;  %s299_s24 = smov 128  }
   0x7   :  { %s30_s23 = sshll.u32 %s298_s22, 4  ;;  %s300_s25 = smov 8   ;;  %s31_s23 = int_to_ptr.vmem [resolvable:$true] %s30_s23 }
   0x8   :  { %36 = dma.hbm_to_vmem [thread:$0]  %s29_s19, 4096, %s31_s23, [#allocation6], %s299_s24, %s299_s24, %s300_s25  }
   0x9   :  { %289 = dma.done.wait [#allocation3], 1024  }
   0xa   :  { %290 = vsyncadd [#allocation3], 4294966272 }
   0xb   :  { %291 = dma.done.wait [#allocation6], 4096  }
   0xc   :  { %292 = vsyncadd [#allocation6], 4294963200  ;;  %v70_v0 = vld [vmem:[#allocation5 + $0x78] sm:$0xff]  ;;  %v69_v1 = vld [vmem:[#allocation5 + $0x70] sm:$0xff]  ;;  %s163_s29 = sshll.u32 %s343_s3, 4  ;;  %s164_s29 = int_to_ptr.hbm [resolvable:$true] %s163_s29 }
   0xd   :  { %v86_v2 = vld [vmem:[#allocation5 + $0xf8] sm:$0xff]  ;;  %177 = vmatpush.msra.mxu2 %v70_v0  ;;  %v85_v3 = vld [vmem:[#allocation5 + $0xf0] sm:$0xff]  ;;  %v68_v4 = vld [vmem:[#allocation5 + $0x68] sm:$0xff]  ;;  %91 = vmatpush.msra.mxu0 %v70_v0 }
   0xe   :  { %193 = vmatpush.msra.mxu3 %v86_v2  ;;  %v84_v5 = vld [vmem:[#allocation5 + $0xe8] sm:$0xff]  ;;  %120 = vmatpush.msra.mxu1 %v86_v2  ;;  %v67_v6 = vld [vmem:[#allocation5 + $0x60] sm:$0xff]  ;;  %v66_v8 = vld [vmem:[#allocation5 + $0x58] sm:$0xff] }
   0xf   :  { %178 = vmatpush.msra.mxu2 %v69_v1  ;;  %92 = vmatpush.msra.mxu0 %v69_v1  ;;  %v83_v7 = vld [vmem:[#allocation5 + $0xe0] sm:$0xff]  ;;  %v82_v9 = vld [vmem:[#allocation5 + $0xd8] sm:$0xff]  ;;  %v65_v10 = vld [vmem:[#allocation5 + $0x50] sm:$0xff] }
  0x10   :  { %194 = vmatpush.msra.mxu3 %v85_v3  ;;  %121 = vmatpush.msra.mxu1 %v85_v3  ;;  %v81_v11 = vld [vmem:[#allocation5 + $0xd0] sm:$0xff]  ;;  %v64_v12 = vld [vmem:[#allocation5 + $0x48] sm:$0xff]  ;;  %v63_v14 = vld [vmem:[#allocation5 + $0x40] sm:$0xff] }
  0x11   :  { %179 = vmatpush.msra.mxu2 %v68_v4  ;;  %93 = vmatpush.msra.mxu0 %v68_v4  ;;  %v80_v13 = vld [vmem:[#allocation5 + $0xc8] sm:$0xff]  ;;  %v79_v15 = vld [vmem:[#allocation5 + $0xc0] sm:$0xff]  ;;  %v62_v16 = vld [vmem:[#allocation5 + $0x38] sm:$0xff] }
  0x12   :  { %195 = vmatpush.msra.mxu3 %v84_v5  ;;  %122 = vmatpush.msra.mxu1 %v84_v5  ;;  %v78_v17 = vld [vmem:[#allocation5 + $0xb8] sm:$0xff]  ;;  %v61_v18 = vld [vmem:[#allocation5 + $0x30] sm:$0xff]  ;;  %v60_v20 = vld [vmem:[#allocation5 + $0x28] sm:$0xff] }
  0x13   :  { %180 = vmatpush.msra.mxu2 %v67_v6  ;;  %94 = vmatpush.msra.mxu0 %v67_v6  ;;  %v77_v19 = vld [vmem:[#allocation5 + $0xb0] sm:$0xff]  ;;  %v76_v21 = vld [vmem:[#allocation5 + $0xa8] sm:$0xff]  ;;  %v59_v22 = vld [vmem:[#allocation5 + $0x20] sm:$0xff] }
  0x14   :  { %196 = vmatpush.msra.mxu3 %v83_v7  ;;  %123 = vmatpush.msra.mxu1 %v83_v7  ;;  %v75_v23 = vld [vmem:[#allocation5 + $0xa0] sm:$0xff]  ;;  %v58_v24 = vld [vmem:[#allocation5 + $0x18] sm:$0xff]  ;;  %v57_v26 = vld [vmem:[#allocation5 + $0x10] sm:$0xff] }
  0x15   :  { %181 = vmatpush.msra.mxu2 %v66_v8  ;;  %95 = vmatpush.msra.mxu0 %v66_v8  ;;  %v74_v25 = vld [vmem:[#allocation5 + $0x98] sm:$0xff]  ;;  %v73_v27 = vld [vmem:[#allocation5 + $0x90] sm:$0xff]  ;;  %v56_v28 = vld [vmem:[#allocation5 + $0x8] sm:$0xff] }
  0x16   :  { %197 = vmatpush.msra.mxu3 %v82_v9  ;;  %124 = vmatpush.msra.mxu1 %v82_v9  ;;  %v72_v29 = vld [vmem:[#allocation5 + $0x88] sm:$0xff]  ;;  %v55_v30 = vld [vmem:[#allocation5] sm:$0xff]  ;;  %v53_v36 = vld [vmem:[#allocation2 + $0x30] sm:$0xff] }
  0x17   :  { %182 = vmatpush.msra.mxu2 %v65_v10  ;;  %96 = vmatpush.msra.mxu0 %v65_v10  ;;  %v71_v31 = vld [vmem:[#allocation5 + $0x80] sm:$0xff]  ;;  %v52_v33 = vld [vmem:[#allocation2 + $0x28] sm:$0xff]  ;;  %v54_v37 = vld [vmem:[#allocation2 + $0x38] sm:$0xff] }
  0x18   :  { %198 = vmatpush.msra.mxu3 %v81_v11  ;;  %125 = vmatpush.msra.mxu1 %v81_v11  ;;  %v51_v32 = vld [vmem:[#allocation2 + $0x20] sm:$0xff]  ;;  %v48_v35 = vld [vmem:[#allocation2 + $0x8] sm:$0xff]  ;;  %v49_v38 = vld [vmem:[#allocation2 + $0x10] sm:$0xff] }
  0x19   :  { %183 = vmatpush.msra.mxu2 %v64_v12  ;;  %97 = vmatpush.msra.mxu0 %v64_v12  ;;  %v47_v34 = vld [vmem:[#allocation2] sm:$0xff]  ;;  %v50_v39 = vld [vmem:[#allocation2 + $0x18] sm:$0xff] }
  0x1a   :  { %199 = vmatpush.msra.mxu3 %v80_v13  ;;  %126 = vmatpush.msra.mxu1 %v80_v13  ;;  %v216_v40 = vld [vmem:[%s342_s2] ss:$0 sm:$0xff]  ;;  %s301_s2 = smov [#allocation7]  }
  0x1b   :  { %184 = vmatpush.msra.mxu2 %v63_v14  ;;  %98 = vmatpush.msra.mxu0 %v63_v14  ;;  %s161_s26 = sshll.u32 %s301_s2, 4  ;;  %s162_s26 = int_to_ptr.vmem [resolvable:$true] %s161_s26 }
  0x1c   :  { %200 = vmatpush.msra.mxu3 %v79_v15  ;;  %127 = vmatpush.msra.mxu1 %v79_v15 }
  0x1d   :  { %185 = vmatpush.msra.mxu2 %v62_v16  ;;  %99 = vmatpush.msra.mxu0 %v62_v16 }
  0x1e   :  { %201 = vmatpush.msra.mxu3 %v78_v17  ;;  %128 = vmatpush.msra.mxu1 %v78_v17 }
  0x1f   :  { %186 = vmatpush.msra.mxu2 %v61_v18  ;;  %100 = vmatpush.msra.mxu0 %v61_v18 }
  0x20   :  { %202 = vmatpush.msra.mxu3 %v77_v19  ;;  %129 = vmatpush.msra.mxu1 %v77_v19 }
  0x21   :  { %187 = vmatpush.msra.mxu2 %v60_v20  ;;  %101 = vmatpush.msra.mxu0 %v60_v20 }
  0x22   :  { %203 = vmatpush.msra.mxu3 %v76_v21  ;;  %130 = vmatpush.msra.mxu1 %v76_v21 }
  0x23   :  { %188 = vmatpush.msra.mxu2 %v59_v22  ;;  %102 = vmatpush.msra.mxu0 %v59_v22 }
  0x24   :  { %204 = vmatpush.msra.mxu3 %v75_v23  ;;  %131 = vmatpush.msra.mxu1 %v75_v23 }
  0x25   :  { %189 = vmatpush.msra.mxu2 %v58_v24  ;;  %103 = vmatpush.msra.mxu0 %v58_v24 }
  0x26   :  { %205 = vmatpush.msra.mxu3 %v74_v25  ;;  %132 = vmatpush.msra.mxu1 %v74_v25 }
  0x27   :  { %190 = vmatpush.msra.mxu2 %v57_v26  ;;  %104 = vmatpush.msra.mxu0 %v57_v26 }
  0x28   :  { %206 = vmatpush.msra.mxu3 %v73_v27  ;;  %133 = vmatpush.msra.mxu1 %v73_v27 }
  0x29   :  { %191 = vmatpush.msra.mxu2 %v56_v28  ;;  %105 = vmatpush.msra.mxu0 %v56_v28 }
  0x2a   :  { %207 = vmatpush.msra.mxu3 %v72_v29  ;;  %134 = vmatpush.msra.mxu1 %v72_v29 }
  0x2b   :  { %192 = vmatpush.msra.mxu2 %v55_v30  ;;  %106 = vmatpush.msra.mxu0 %v55_v30 }
  0x2c   :  { %208 = vmatpush.msra.mxu3 %v71_v31  ;;  %113 = vmatmul.f32.vlgmr.msra.gmra.mxu2 %v51_v32 }
  0x2d   :  { %142 = vmatmul.f32.vlgmr.msra.gmra.mxu3 %v52_v33  ;;  %135 = vmatpush.msra.mxu1 %v71_v31 }
  0x2e   :  { %107 = vmatmul.f32.vlgmr.msra.gmra.mxu0 %v47_v34  ;;  %136 = vmatmul.f32.vlgmr.msra.gmra.mxu1 %v48_v35 }
  0x34   :  { %116 = vmatmul.f32.gmra.mxu2 %v53_v36 }
  0x35   :  { %145 = vmatmul.f32.gmra.mxu3 %v54_v37 }
  0x36   :  { %110 = vmatmul.f32.gmra.mxu0 %v49_v38  ;;  %139 = vmatmul.f32.gmra.mxu1 %v50_v39 }
  0xab   :  { %v108_v41 = vpop.f32.mrf.mxu0  ;;  %v137_v42 = vpop.f32.mrf.mxu1 }
  0xac   :  { %v109_v43 = vadd.f32 %v216_v40, %v108_v41 }
  0xae   :  { %v138_v44 = vadd.f32 %v137_v42, %v109_v43 }
  0xaf   :  { %v114_v45 = vpop.f32.mrf.mxu2 }
  0xb0   :  { %v143_v46 = vpop.f32.mrf.mxu3  ;;  %v115_v47 = vadd.f32 %v216_v40, %v114_v45  ;;  %v149_v48 = vmax.f32 %v138_v44, 0.0 }
  0xb2   :  { %153 = vst [vmem:[#allocation7] sm:$0xff] %v149_v48  ;;  %v144_v49 = vadd.f32 %v143_v46, %v115_v47 }
  0xb3   :  { %v111_v50 = vpop.f32.mrf.mxu0  ;;  %v140_v51 = vpop.f32.mrf.mxu1 }
  0xb4   :  { %v151_v52 = vmax.f32 %v144_v49, 0.0  ;;  %v112_v53 = vadd.f32 %v216_v40, %v111_v50 }
  0xb6   :  { %155 = vst [vmem:[#allocation7 + $0x10] sm:$0xff] %v151_v52  ;;  %v141_v54 = vadd.f32 %v140_v51, %v112_v53 }
  0xb7   :  { %v117_v55 = vpop.f32.mrf.mxu2 }
  0xb8   :  { %v146_v56 = vpop.f32.mrf.mxu3  ;;  %v118_v57 = vadd.f32 %v216_v40, %v117_v55  ;;  %v150_v58 = vmax.f32 %v141_v54, 0.0 }
  0xba   :  { %154 = vst [vmem:[#allocation7 + $0x8] sm:$0xff] %v150_v58  ;;  %v147_v59 = vadd.f32 %v146_v56, %v118_v57 }
  0xbc   :  { %v152_v60 = vmax.f32 %v147_v59, 0.0 }
  0xbe   :  { %156 = vst [vmem:[#allocation7 + $0x18] sm:$0xff] %v152_v60 }
  0xbf   :  { %169 = dma.vmem_to_hbm [thread:$0]  %s162_s26, 512, %s164_s29, [#allocation4], %s299_s24, %s299_s24, %s300_s25  }
  0xc0   :  { %293 = dma.done.wait [#allocation4], 512  }
  0xc1   :  { %294 = vsyncadd [#allocation4], 4294966784 }
  0xc2   :  { %174 = vsyncpa [#allocation3], 1 }
  0xc3   :  { %175 = vsyncpa [#allocation6], 1 }
  0xc4   :  { %176 = vsyncpa [#allocation4], 1 }

</bundles_post_ra>
